<compile_context>
chip_gen: v7x
topology: tpu7x:2x2x1
jax: 0.10.0
libtpu: 0.0.40
codegen_flags: <defaults>
</compile_context>

<pallas_src>
import functools

import jax
import jax.numpy as jnp
from jax import lax
from jax.experimental import pallas as pl
from jax.experimental.pallas import tpu as pltpu


_INV_SQRT2 = 0.7071067811865476


# ---------------------------------------------------------------------------
# Kernels
# ---------------------------------------------------------------------------
def _mlp_kernel_inplace(x_ref, w1_ref, b1_ref, w2_ref, b2_ref, o_ref):
    """f32 output: o_ref doubles as the accumulator (resident across h)."""
    # x_ref:  (TM, E)  bf16     w1_ref: (E, TH) bf16   b1_ref: (1, TH) f32
    # w2_ref: (TH, E)  bf16     b2_ref: (1, E)  f32    o_ref:  (TM, E) f32
    h_idx = pl.program_id(1)

    @pl.when(h_idx == 0)
    def _init():
        o_ref[...] = jnp.zeros_like(o_ref)

    h = jnp.dot(x_ref[...], w1_ref[...], preferred_element_type=jnp.float32)
    h = h + b1_ref[...]
    # Exact (erf-based) GELU, matching torch.nn.GELU() default, in f32.
    h = 0.5 * h * (1.0 + lax.erf(h * jnp.float32(_INV_SQRT2)))
    o_ref[...] += jnp.dot(h.astype(jnp.bfloat16), w2_ref[...],
                          preferred_element_type=jnp.float32)

    @pl.when(h_idx == pl.num_programs(1) - 1)
    def _finalize():
        o_ref[...] = o_ref[...] + b2_ref[...]


def _mlp_kernel_scratch(x_ref, w1_ref, b1_ref, w2_ref, b2_ref, o_ref, acc_ref):
    """Non-f32 output: accumulate in an f32 VMEM scratch, cast at the end."""
    h_idx = pl.program_id(1)

    @pl.when(h_idx == 0)
    def _init():
        acc_ref[...] = jnp.zeros_like(acc_ref)

    h = jnp.dot(x_ref[...], w1_ref[...], preferred_element_type=jnp.float32)
    h = h + b1_ref[...]
    h = 0.5 * h * (1.0 + lax.erf(h * jnp.float32(_INV_SQRT2)))
    acc_ref[...] += jnp.dot(h.astype(jnp.bfloat16), w2_ref[...],
                            preferred_element_type=jnp.float32)

    @pl.when(h_idx == pl.num_programs(1) - 1)
    def _finalize():
        o_ref[...] = (acc_ref[...] + b2_ref[...]).astype(o_ref.dtype)


# ---------------------------------------------------------------------------
# Host-side tiling helpers
# ---------------------------------------------------------------------------
def _round_up(v, m):
    return ((v + m - 1) // m) * m


def _hw_config():
    """Generation-aware tiling defaults; conservative fallback if unknown."""
    try:
        kind = jax.devices()[0].device_kind.lower()
    except Exception:  # pragma: no cover
        kind = ""
    try:
        vmem_cap = int(pltpu.get_tpu_info().vmem_capacity_bytes)
    except Exception:  # pragma: no cover
        vmem_cap = 64 << 20  # conservative (v7x-sized)

    if "v7" in kind:        # v7x: 64 MiB VMEM, 3.2 TB/s HBM, 2 TCs
        return dict(tm=512, th_mult=256, th_target=8 << 20,
                    vmem_cap=min(vmem_cap, 64 << 20), two_core=True)
    if "v6" in kind:        # v6e: 128 MiB VMEM, DMA-bound below TM~670
        return dict(tm=1024, th_mult=256, th_target=12 << 20,
                    vmem_cap=vmem_cap, two_core=False)
    if "v5" in kind:        # v5e: compute-bound at TM>=~256, 128x128 MXU
        return dict(tm=256, th_mult=128, th_target=8 << 20,
                    vmem_cap=vmem_cap, two_core=False)
    # Unknown generation: conservative.
    return dict(tm=512, th_mult=128, th_target=6 << 20,
                vmem_cap=min(vmem_cap, 64 << 20), two_core=False)


def _vmem_estimate_bytes(tm, e, th, out_is_f32):
    f32, bf16 = 4, 2
    x_b = 2 * tm * e * bf16           # x row tile (double-buffered, bf16 now)
    w1_b = 2 * e * th * bf16          # streamed w1 block
    w2_b = 2 * th * e * bf16          # streamed w2 block
    b1_b = 2 * 8 * th * f32           # bias blocks (sublane-padded)
    b2_b = 2 * 8 * e * f32
    out_b = 2 * tm * e * (f32 if out_is_f32 else bf16)
    acc_b = 0 if out_is_f32 else tm * e * f32
    tmp_b = 2 * tm * th * f32         # GELU / matmul intermediates
    return x_b + w1_b + w2_b + b1_b + b2_b + out_b + acc_b + tmp_b


def _pick_tiles(n, e, h, cfg, out_is_f32, block_m=None):
    budget = int(0.80 * cfg["vmem_cap"])

    tm0 = block_m if block_m is not None else cfg["tm"]
    tm = min(tm0, _round_up(n, 16))
    tm = max(16, (tm // 16) * 16)
    # Megacore: on 2-TC parts make sure the "parallel" row axis has >= 2 tiles.
    if cfg["two_core"] and n >= 32 and pl.cdiv(n, tm) == 1:
        tm = max(16, _round_up(pl.cdiv(n, 2), 16))

    def pick_th(tm_):
        # Full-resident weights: hidden axis collapses, w1/w2 DMA'd once.
        if _vmem_estimate_bytes(tm_, e, h, out_is_f32) <= budget:
            return h
        if h % 128 != 0:
            return h  # (8,128) rule requires full-dim blocks otherwise
        mult = cfg["th_mult"] if h % cfg["th_mult"] == 0 else 128
        best = mult
        th_try = mult
        while th_try <= h:
            if (h % th_try == 0 and e * th_try * 2 <= cfg["th_target"]
                    and _vmem_estimate_bytes(tm_, e, th_try, out_is_f32) <= budget):
                best = th_try
            th_try += mult
        return best

    th = pick_th(tm)
    # If even the smallest hidden tile overflows the budget, shrink the row tile.
    while tm > 16 and _vmem_estimate_bytes(tm, e, th, out_is_f32) > budget:
        tm = max(16, ((tm // 2) // 16) * 16)
        th = pick_th(tm)
    return tm, th


# ---------------------------------------------------------------------------
# Public entry point
# ---------------------------------------------------------------------------
@functools.partial(jax.jit, static_argnames=("block_m",))
def mlp_pallas(x, w1, b1, w2, b2, *, block_m=None):
    """x: (..., E). Weights: w1 (E, 4E), b1 (4E,), w2 (4E, E), b2 (E,).
    Weight layout is (in_features, out_features), i.e. transposed vs nn.Linear.
    Matmul operands are bf16 with f32 accumulation (documented precision)."""
    orig_shape = x.shape
    E = orig_shape[-1]
    H = w1.shape[1]
    x2d = x.reshape(-1, E)
    n = x2d.shape[0]

    out_dtype = x.dtype
    out_is_f32 = out_dtype == jnp.float32

    cfg = _hw_config()
    tm, th = _pick_tiles(n, E, H, cfg, out_is_f32, block_m)

    # bf16 activations + weights (cast once on the host); biases stay f32.
    x_bf = x2d.astype(jnp.bfloat16)
    w1_bf = w1.astype(jnp.bfloat16)
    w2_bf = w2.astype(jnp.bfloat16)
    b1_2d = b1.reshape(1, H).astype(jnp.float32)
    b2_2d = b2.reshape(1, E).astype(jnp.float32)

    grid = (pl.cdiv(n, tm), H // th)

    est = _vmem_estimate_bytes(tm, E, th, out_is_f32)
    vmem_limit = min(max(est + (4 << 20), 32 << 20),
                     int(0.85 * cfg["vmem_cap"]))

    if out_is_f32:
        kernel = _mlp_kernel_inplace
        scratch_shapes = []
    else:
        kernel = _mlp_kernel_scratch
        scratch_shapes = [pltpu.VMEM((tm, E), jnp.float32)]

    out = pl.pallas_call(
        kernel,
        out_shape=jax.ShapeDtypeStruct((n, E), out_dtype),
        grid_spec=pltpu.PrefetchScalarGridSpec(
            num_scalar_prefetch=0,
            grid=grid,
            in_specs=[
                pl.BlockSpec((tm, E), lambda i, h: (i, 0)),   # x row tile (revisited over h)
                pl.BlockSpec((E, th), lambda i, h: (0, h)),   # w1 hidden block (streamed)
                pl.BlockSpec((1, th), lambda i, h: (0, h)),   # b1 hidden block
                pl.BlockSpec((th, E), lambda i, h: (h, 0)),   # w2 hidden block (streamed)
                pl.BlockSpec((1, E), lambda i, h: (0, 0)),    # b2 (constant)
            ],
            out_specs=pl.BlockSpec((tm, E), lambda i, h: (i, 0)),
            scratch_shapes=scratch_shapes,
        ),
        compiler_params=pltpu.CompilerParams(
            dimension_semantics=("parallel", "arbitrary"),
            vmem_limit_bytes=int(vmem_limit),
        ),
    )(x_bf, w1_bf, b1_2d, w2_bf, b2_2d)

    return out.reshape(orig_shape)


# ---------------------------------------------------------------------------
# Reference / demo
# ---------------------------------------------------------------------------
def init_mlp_params(key, embed_dim):
    """Deterministic init mirroring nn.Linear shapes (weights stored transposed)."""
    hidden = 4 * embed_dim
    k1, k2, k3, k4 = jax.random.split(key, 4)
    lim1 = 1.0 / jnp.sqrt(embed_dim)
    lim2 = 1.0 / jnp.sqrt(hidden)
    w1 = jax.random.uniform(k1, (embed_dim, hidden), jnp.float32, -lim1, lim1)
    b1 = jax.random.uniform(k2, (hidden,), jnp.float32, -lim1, lim1)
    w2 = jax.random.uniform(k3, (hidden, embed_dim), jnp.float32, -lim2, lim2)
    b2 = jax.random.uniform(k4, (embed_dim,), jnp.float32, -lim2, lim2)
    return w1, b1, w2, b2


def mlp_reference(x, w1, b1, w2, b2):
    """Pure-JAX f32 reference (true f32 matmuls)."""
    h = jnp.dot(x, w1, precision=lax.Precision.HIGHEST) + b1
    h = 0.5 * h * (1.0 + lax.erf(h / jnp.sqrt(2.0)))
    return jnp.dot(h, w2, precision=lax.Precision.HIGHEST) + b2


if __name__ == "__main__":
    embed_dim = 32
    batch, seq = 2, 8

    key = jax.random.PRNGKey(0)
    kx, kp = jax.random.split(key)
    x = jax.random.normal(kx, (batch, seq, embed_dim), dtype=jnp.float32)
    w1, b1, w2, b2 = init_mlp_params(kp, embed_dim)

    out = mlp_pallas(x, w1, b1, w2, b2)
    out = jax.block_until_ready(out)

    ref = mlp_reference(x, w1, b1, w2, b2)
    assert out.shape == x.shape
    max_err = float(jnp.max(jnp.abs(out - ref)))
    # bf16 matmul operands with f32 accumulation -> loose-ish tolerance vs f32 ref.
    assert jnp.allclose(out, ref, atol=2e-2, rtol=2e-2), (
        f"mismatch vs reference, max abs err = {max_err}")

    print("KERNEL_OK")
</pallas_src>

<mosaic_0001>
module attributes {stable_mosaic.version = 11 : i64} {
  func.func @_mlp_kernel_inplace(%arg0: i32, %arg1: i32, %arg2: memref<16x32xbf16, #tpu.memory_space<vmem>>, %arg3: memref<32x128xbf16, #tpu.memory_space<vmem>>, %arg4: memref<1x128xf32, #tpu.memory_space<vmem>>, %arg5: memref<128x32xbf16, #tpu.memory_space<vmem>>, %arg6: memref<1x32xf32, #tpu.memory_space<vmem>>, %arg7: memref<16x32xf32, #tpu.memory_space<vmem>>) attributes {dimension_semantics = [#tpu.dimension_semantics<parallel>, #tpu.dimension_semantics<arbitrary>], iteration_bounds = array<i64: 1, 1>, scalar_prefetch = 0 : i64, scratch_operands = 0 : i64, tpu.core_type = #tpu.core_type<tc>, window_params = [{transform_indices = @transform_0, window_bounds = array<i64: 16, 32>}, {transform_indices = @transform_1, window_bounds = array<i64: 32, 128>}, {transform_indices = @transform_2, window_bounds = array<i64: 1, 128>}, {transform_indices = @transform_3, window_bounds = array<i64: 128, 32>}, {pipeline_mode = #tpu.pipeline_mode<synchronous>, transform_indices = @transform_4, window_bounds = array<i64: 1, 32>}, {transform_indices = @transform_5, window_bounds = array<i64: 16, 32>}]} {
    %c0_i32 = arith.constant 0 : i32
    %0 = arith.cmpi eq, %arg1, %c0_i32 : i32
    %1 = arith.extui %0 : i1 to i32
    %c0_i32_0 = arith.constant 0 : i32
    %2 = arith.cmpi ne, %1, %c0_i32_0 : i32
    scf.if %2 {
      %cst_18 = arith.constant 0.000000e+00 : f32
      %26 = vector.broadcast %cst_18 : f32 to vector<16x32xf32>
      %c0_19 = arith.constant 0 : index
      %c0_20 = arith.constant 0 : index
      %27 = vector.load %arg7[%c0_19, %c0_20] : memref<16x32xf32, #tpu.memory_space<vmem>>, vector<16x32xf32>
      tpu.vector_store %arg7[%c0_19, %c0_20], %26 {strides = array<i32>} : memref<16x32xf32, #tpu.memory_space<vmem>>, vector<16x32xf32>,
    } else {
    }
    %c0 = arith.constant 0 : index
    %c0_1 = arith.constant 0 : index
    %3 = vector.load %arg2[%c0, %c0_1] : memref<16x32xbf16, #tpu.memory_space<vmem>>, vector<16x32xbf16>
    %c0_2 = arith.constant 0 : index
    %c0_3 = arith.constant 0 : index
    %4 = vector.load %arg3[%c0_2, %c0_3] : memref<32x128xbf16, #tpu.memory_space<vmem>>, vector<32x128xbf16>
    %cst = arith.constant dense<0.000000e+00> : vector<16x128xf32>
    %5 = tpu.matmul %3, %4, %cst {dimension_numbers = #tpu.dot_dimension_numbers<[1], [0], [0], [1], [0, 0, 1, 1], [], []>} : vector<16x32xbf16>, vector<32x128xbf16>, vector<16x128xf32> -> vector<16x128xf32>
    %c0_4 = arith.constant 0 : index
    %c0_5 = arith.constant 0 : index
    %6 = vector.load %arg4[%c0_4, %c0_5] : memref<1x128xf32, #tpu.memory_space<vmem>>, vector<1x128xf32>
    %7 = vector.broadcast %6 : vector<1x128xf32> to vector<16x128xf32>
    %8 = arith.addf %5, %7 : vector<16x128xf32>
    %cst_6 = arith.constant 5.000000e-01 : f32
    %9 = vector.broadcast %cst_6 : f32 to vector<16x128xf32>
    %10 = arith.mulf %9, %8 : vector<16x128xf32>
    %cst_7 = arith.constant 0.707106769 : f32
    %11 = vector.broadcast %cst_7 : f32 to vector<16x128xf32>
    %12 = arith.mulf %8, %11 : vector<16x128xf32>
    %13 = math.erf %12 : vector<16x128xf32>
    %cst_8 = arith.constant 1.000000e+00 : f32
    %14 = vector.broadcast %cst_8 : f32 to vector<16x128xf32>
    %15 = arith.addf %14, %13 : vector<16x128xf32>
    %16 = arith.mulf %10, %15 : vector<16x128xf32>
    %c0_9 = arith.constant 0 : index
    %c0_10 = arith.constant 0 : index
    %17 = vector.load %arg7[%c0_9, %c0_10] : memref<16x32xf32, #tpu.memory_space<vmem>>, vector<16x32xf32>
    %18 = arith.truncf %16 : vector<16x128xf32> to vector<16x128xbf16>
    %c0_11 = arith.constant 0 : index
    %c0_12 = arith.constant 0 : index
    %19 = vector.load %arg5[%c0_11, %c0_12] : memref<128x32xbf16, #tpu.memory_space<vmem>>, vector<128x32xbf16>
    %cst_13 = arith.constant dense<0.000000e+00> : vector<16x32xf32>
    %20 = tpu.matmul %18, %19, %cst_13 {dimension_numbers = #tpu.dot_dimension_numbers<[1], [0], [0], [1], [0, 0, 1, 1], [], []>} : vector<16x128xbf16>, vector<128x32xbf16>, vector<16x32xf32> -> vector<16x32xf32>
    %21 = arith.addf %17, %20 : vector<16x32xf32>
    %c0_14 = arith.constant 0 : index
    %c0_15 = arith.constant 0 : index
    %22 = vector.load %arg7[%c0_14, %c0_15] : memref<16x32xf32, #tpu.memory_space<vmem>>, vector<16x32xf32>
    tpu.vector_store %arg7[%c0_14, %c0_15], %21 {strides = array<i32>} : memref<16x32xf32, #tpu.memory_space<vmem>>, vector<16x32xf32>,
    %c0_i32_16 = arith.constant 0 : i32
    %23 = arith.cmpi eq, %arg1, %c0_i32_16 : i32
    %24 = arith.extui %23 : i1 to i32
    %c0_i32_17 = arith.constant 0 : i32
    %25 = arith.cmpi ne, %24, %c0_i32_17 : i32
    scf.if %25 {
      %c0_18 = arith.constant 0 : index
      %c0_19 = arith.constant 0 : index
      %26 = vector.load %arg7[%c0_18, %c0_19] : memref<16x32xf32, #tpu.memory_space<vmem>>, vector<16x32xf32>
      %c0_20 = arith.constant 0 : index
      %c0_21 = arith.constant 0 : index
      %27 = vector.load %arg6[%c0_20, %c0_21] : memref<1x32xf32, #tpu.memory_space<vmem>>, vector<1x32xf32>
      %28 = vector.broadcast %27 : vector<1x32xf32> to vector<16x32xf32>
      %29 = arith.addf %26, %28 : vector<16x32xf32>
      %c0_22 = arith.constant 0 : index
      %c0_23 = arith.constant 0 : index
      %30 = vector.load %arg7[%c0_22, %c0_23] : memref<16x32xf32, #tpu.memory_space<vmem>>, vector<16x32xf32>
      tpu.vector_store %arg7[%c0_22, %c0_23], %29 {strides = array<i32>} : memref<16x32xf32, #tpu.memory_space<vmem>>, vector<16x32xf32>,
    } else {
    }
    return
  }
  func.func @transform_0(%arg0: i32, %arg1: i32) -> (i32, i32) {
    %c0_i32 = arith.constant 0 : i32
    %c0_i32_0 = arith.constant 0 : i32
    return %arg0, %c0_i32 : i32, i32
  }
  func.func @transform_1(%arg0: i32, %arg1: i32) -> (i32, i32) {
    %c0_i32 = arith.constant 0 : i32
    %c0_i32_0 = arith.constant 0 : i32
    return %c0_i32, %arg1 : i32, i32
  }
  func.func @transform_2(%arg0: i32, %arg1: i32) -> (i32, i32) {
    %c0_i32 = arith.constant 0 : i32
    %c0_i32_0 = arith.constant 0 : i32
    return %c0_i32, %arg1 : i32, i32
  }
  func.func @transform_3(%arg0: i32, %arg1: i32) -> (i32, i32) {
    %c0_i32 = arith.constant 0 : i32
    %c0_i32_0 = arith.constant 0 : i32
    return %arg1, %c0_i32 : i32, i32
  }
  func.func @transform_4(%arg0: i32, %arg1: i32) -> (i32, i32) {
    %c0_i32 = arith.constant 0 : i32
    %c0_i32_0 = arith.constant 0 : i32
    %c0_i32_1 = arith.constant 0 : i32
    return %c0_i32, %c0_i32_0 : i32, i32
  }
  func.func @transform_5(%arg0: i32, %arg1: i32) -> (i32, i32) {
    %c0_i32 = arith.constant 0 : i32
    %c0_i32_0 = arith.constant 0 : i32
    return %arg0, %c0_i32 : i32, i32
  }
}

</mosaic_0001>

<bundles_post_ra>
// kernel: mlp_pallas.1
= control target key start
LH: loop header
LB: loop body
LE: loop exit
PB: predicated region body
PF: predicated region fallthrough
CT: control target
= control target key end

     0   :  { %v356_v1 = vmov 0.0   ;;  %vm357_vm0 = vmmov 0   ;;  %vm26_vm1 = vcmask 261120   ;;  %s449_s0 = inlined_call_operand.vmem [shape: bf16[16,32], index: 0, kind: input, shape index: {}]   ;;  %s450_s1 = inlined_call_operand.vmem [shape: bf16[32,128], index: 1, kind: input, shape index: {}]   ;;  %s451_s2 = inlined_call_operand.vmem [shape: f32[1,128], index: 2, kind: input, shape index: {}]   ;;  %s452_s3 = inlined_call_operand.vmem [shape: bf16[128,32], index: 3, kind: input, shape index: {}]   ;;  %s453_s4 = inlined_call_operand.vmem [shape: f32[1,32], index: 4, kind: input, shape index: {}]   ;;  %s454_s5 = inlined_call_operand.hbm [shape: f32[16,32], index: 5, kind: output, shape index: {}]  }
   0x1   :  { %v317_v0 = vld [vmem:[%s450_s1] sm:$0xff]   ;;  %284 = vmatprep.subr.bf16.mxu0 %v356_v1  ;;  %292 = vmatprep.subr.bf16.mxu1 %v356_v1  ;;  %v318_v2 = vld [vmem:[%s450_s1 + $0x8] sm:$0xff]   ;;  %27 = vst.msk [vmem:[#allocation2] sm:$0xff] %vm26_vm1, %v356_v1  ;;  %28 = vst.msk [vmem:[#allocation2 + $0x8] sm:$0xff] %vm26_vm1, %v356_v1 }
   0x2   :  { %285 = vmatpush3.bf16.msra.mxu0 %v317_v0  ;;  %288 = vmatprep.mubr.msk.bf16.mxu0 %vm357_vm0, %v356_v1  ;;  %v320_v3 = vld [vmem:[%s452_s3] sm:$0xff]   ;;  %v321_v5 = vld [vmem:[%s452_s3 + $0x8] sm:$0xff]  }
   0x3   :  { %286 = vmatprep.subr.bf16.mxu0 %v356_v1  ;;  %308 = vmatprep.mubr.msk.bf16.mxu1 %vm357_vm0, %v356_v1  ;;  %v319_v4 = vld [vmem:[%s449_s0] sm:$0xff]  }
   0x4   :  { %293 = vmatpush3.bf16.msra.mxu1 %v320_v3 }
   0x5   :  { %294 = vmatprep.subr.bf16.mxu1 %v356_v1 }
   0x6   :  { %287 = vmatpush3.bf16.msra.mxu0 %v318_v2 }
   0x8   :  { %295 = vmatpush3.bf16.msra.mxu1 %v321_v5 }
   0x9   :  { %289 = vmatmul.mubr.msk.bf16.vlgmr.msra.gmra.mrb[0].mxu0 %vm26_vm1, %v319_v4 }
   0xa   :  { %10 = vsyncpa [#allocation3], 0  ;;  %296 = vmatprep.subr.bf16.mxu1 %v356_v1  ;;  %v322_v6 = vld [vmem:[%s452_s3 + $0x10] sm:$0xff]   ;;  %v323_v7 = vld [vmem:[%s452_s3 + $0x18] sm:$0xff]   ;;  %s358_s15 = smov [#allocation2]  }
   0xb   :  { %v324_v8 = vld [vmem:[%s452_s3 + $0x20] sm:$0xff]   ;;  %v325_v9 = vld [vmem:[%s452_s3 + $0x28] sm:$0xff]   ;;  %v326_v10 = vld [vmem:[%s452_s3 + $0x30] sm:$0xff]   ;;  %s247_s16 = sshll.u32 %s358_s15, 4  ;;  %s248_s16 = int_to_ptr.vmem [resolvable:$true] %s247_s16 }
   0xc   :  { %297 = vmatpush3.bf16.msra.mxu1 %v322_v6  ;;  %v327_v11 = vld [vmem:[%s452_s3 + $0x38] sm:$0xff]   ;;  %v258_v12 = vld [vmem:[%s451_s2] ss:$0 sm:$0xff]  ;;  %v115_v32 = vld [vmem:[#allocation2 + $0x8] sm:$0xff]  ;;  %s332_s17 = scalar_lea.vmem %s248_s16, 256  ;;  %p337_p1 = scmp.lt.s32.totalorder %s248_s16, %s248_s16 }
   0xd   :  { %298 = vmatprep.subr.bf16.mxu1 %v356_v1  ;;  %v114_v30 = vld [vmem:[#allocation2] sm:$0xff]  ;;  %p333_p0 = scmp.ne.s32.totalorder %s248_s16, %s332_s17  ;;  %p338_p2 = scmp.lt.s32.totalorder %s332_s17, %s332_s17 }
   0xe   :  { %v271_v38 = vld [vmem:[%s453_s4] ss:$0 sm:$0xff] }
   0xf   :  { %p339_p3 = por %p338_p2, %p337_p1 }
  0x10   :  { %299 = vmatpush3.bf16.msra.mxu1 %v323_v7 }
  0x11   :  { %300 = vmatprep.subr.bf16.mxu1 %v356_v1  ;;  %p340_p4 = pnand %p339_p3, %p333_p0 }
  0x14   :  { %301 = vmatpush3.bf16.msra.mxu1 %v324_v8 }
  0x15   :  { %302 = vmatprep.subr.bf16.mxu1 %v356_v1 }
  0x18   :  { %303 = vmatpush3.bf16.msra.mxu1 %v325_v9 }
  0x19   :  { %304 = vmatprep.subr.bf16.mxu1 %v356_v1 }
  0x1c   :  { %305 = vmatpush3.bf16.msra.mxu1 %v326_v10 }
  0x1d   :  { %306 = vmatprep.subr.bf16.mxu1 %v356_v1 }
  0x20   :  { %307 = vmatpush3.bf16.msra.mxu1 %v327_v11 }
  0xdc   :  { %v97_v13 = vpop.f32.mrb[0].mxu0 }
  0xdd   :  { %v98_v14 = vadd.f32 %v258_v12, %v97_v13  ;;  %v290_v15 = vpop.f32.mrb[1].mxu0 }
  0xde   :  { %v100_v16 = vpop.f32.mrb[2].mxu0 }
  0xdf   :  { %v106_v17 = vmul.f32 0.70710677, %v98_v14  ;;  %v101_v18 = vadd.f32 %v258_v12, %v100_v16  ;;  %v291_v19 = vpop.f32.mrb[3].mxu0  ;;  %v104_v24 = vmul.f32 0.5, %v98_v14 }
  0xe1   :  { %328 = verf.f32 %v106_v17  ;;  %v107_v20 = vmul.f32 0.70710677, %v101_v18  ;;  %v105_v25 = vmul.f32 0.5, %v101_v18 }
  0xe3   :  { %330 = verf.f32 %v107_v20 }
  0xeb   :  { %v329_v21 = vpop.eup %328 }
  0xec   :  { %v110_v22 = vadd.f32 1.0, %v329_v21 }
  0xed   :  { %v331_v23 = vpop.eup %330 }
  0xee   :  { %v111_v26 = vadd.f32 1.0, %v331_v23  ;;  %v112_v27 = vmul.f32 %v110_v22, %v104_v24 }
  0xf0   :  { %v113_v28 = vmul.f32 %v111_v26, %v105_v25 }
  0xf2   :  { %v116_v29 = vpack.c.bf16 %v113_v28, %v112_v27 }
  0xf4   :  { %309 = vmatmul.mubr.bf16.vlgmr.msra.gmra.mrb[0].mxu1 %v116_v29 }
 0x1c7   :  { %v215_v31 = vpop.f32.mrb[0].mxu1 }
 0x1c8   :  { %v222_v33 = vadd.f32 %v215_v31, %v114_v30  ;;  %v310_v34 = vpop.f32.mrb[1].mxu1 }
 0x1c9   :  { %v218_v35 = vpop.f32.mrb[2].mxu1 }
 0x1ca   :  { %224 = vst.msk [vmem:[#allocation2] sm:$0xff] %vm26_vm1, %v222_v33  ;;  %v223_v36 = vadd.f32 %v218_v35, %v115_v32  ;;  %v311_v37 = vpop.f32.mrb[3].mxu1 }
 0x1cc   :  { %225 = vst.msk [vmem:[#allocation2 + $0x8] sm:$0xff] %vm26_vm1, %v223_v36 }
 0x1d1   :  { %v229_v39 = vld [vmem:[#allocation2] sm:$0xff] }
 0x1d2   :  { %v238_v40 = vadd.f32 %v271_v38, %v229_v39 }
 0x1d3   :  { %v230_v41 = vld [vmem:[#allocation2 + $0x8] sm:$0xff] }
 0x1d4   :  { %v239_v42 = vadd.f32 %v271_v38, %v230_v41  ;;  %240 = vst.msk [vmem:[#allocation2] sm:$0xff] %vm26_vm1, %v238_v40 }
 0x1d6   :  { %241 = vst.msk [vmem:[#allocation2 + $0x8] sm:$0xff] %vm26_vm1, %v239_v42 }
 0x1d7   :  { %343 = shalt.err (!%p340_p4)
}
 0x1d8   :  { %s344_s19 = scalar_lea.hbm %s454_s5, 256 }
 0x1d9   :  { %p345_p5 = scmp.ne.s32.totalorder %s454_s5, %s344_s19  ;;  %p348_p6 = scmp.lt.u32.totalorder %s344_s19, %s454_s5 }
 0x1db   :  { %p350_p7 = pnand %p348_p6, %p345_p5 }
 0x1dd   :  { %353 = shalt.err (!%p350_p7)
}
 0x1de   :  { %s359_s24 = smov 128   ;;  %s360_s25 = smov 8  }
 0x1df   :  { %253 = dma.vmem_to_hbm [thread:$0]  %s248_s16, 256, %s454_s5, [#allocation3], %s359_s24, %s359_s24, %s360_s25  }
 0x1e0   :  { %354 = dma.done.wait [#allocation3], 256  }
 0x1e1   :  { %355 = vsyncadd [#allocation3], 4294967040 }
 0x1e2   :  { %257 = vsyncpa [#allocation3], 1 }

</bundles_post_ra>
